<compile_context>
chip_gen: v7x
topology: tpu7x:2x2x1
jax: 0.10.0
libtpu: 0.0.40
codegen_flags: <defaults>
</compile_context>

<pallas_src>
import jax
import jax.numpy as jnp
from jax import lax
from jax.experimental import pallas as pl
from jax.experimental.pallas import tpu as pltpu

_BN_EPS = 1e-5
_MIB = 1024 * 1024


# ----------------------------------------------------------------------------
# Stage 1: tiled global-average pooling (memory bound).
#   x*_ref: [tile_n, C, HW]   pooled_ref: [2, tile_n, C]
#   The 1/(H*W) scale is folded into w1 (parameter-side), so a sum suffices.
# ----------------------------------------------------------------------------
def _pool_kernel(x1_ref, x2_ref, pooled_ref):
    pooled_ref[0, :, :] = jnp.sum(x1_ref[...], axis=-1)
    pooled_ref[1, :, :] = jnp.sum(x2_ref[...], axis=-1)


# ----------------------------------------------------------------------------
# Stage 2: fused projection MLP (encoder.fc) + predictor on the pooled acts.
# pooled_ref: [2, N, C]; outputs z_ref, p_ref: [2, N, dim].
# Grid-less call => every weight is DMA'd once and single-buffered in VMEM.
# ----------------------------------------------------------------------------
def _mlp_kernel(pooled_ref, w1_ref, w2_ref, w3_ref, wp1_ref, wp2_ref, vec_ref,
                z_ref, p_ref):
    C = w1_ref.shape[0]
    DIM = w3_ref.shape[1]
    PRED = wp1_ref.shape[1]

    vecs = vec_ref[...]                                  # (8, maxw) f32, one load
    g1, b1 = vecs[0:1, :C], vecs[1:2, :C]
    g2, b2 = vecs[2:3, :C], vecs[3:4, :C]
    b3 = vecs[4:5, :DIM]
    gp1, bp1 = vecs[5:6, :PRED], vecs[6:7, :PRED]
    bp2 = vecs[7:8, :DIM]

    def mm(h, w_ref):
        # Fuse both views into one M = 2N matmul; bf16 operands, f32 accumulate.
        v, n, k = h.shape
        y = jnp.dot(h.reshape(v * n, k).astype(jnp.bfloat16), w_ref[...],
                    preferred_element_type=jnp.float32)
        return y.reshape(v, n, w_ref.shape[1])

    def bn(h, gamma=None, beta=None):
        # BatchNorm1d training-mode forward; statistics PER VIEW (axis=1 is the
        # per-view batch axis), f32, biased variance (matches PyTorch forward).
        mu = jnp.mean(h, axis=1, keepdims=True)
        var = jnp.mean(jnp.square(h - mu), axis=1, keepdims=True)
        hn = (h - mu) * lax.rsqrt(var + _BN_EPS)
        if gamma is not None:
            hn = hn * gamma + beta
        return hn

    x0 = pooled_ref[...]                                 # [2, N, C] f32

    # ---- encoder.fc (projection MLP) ----
    h = mm(x0, w1_ref)                                   # 1/(H*W) folded into w1
    h = jnp.maximum(bn(h, g1, b1), 0.0)
    h = mm(h, w2_ref)
    h = jnp.maximum(bn(h, g2, b2), 0.0)
    h = mm(h, w3_ref) + b3
    z = bn(h)                                            # BN(dim), affine=False
    z_ref[...] = z.astype(z_ref.dtype)

    # ---- predictor ----
    q = mm(z, wp1_ref)
    q = jnp.maximum(bn(q, gp1, bp1), 0.0)
    p = mm(q, wp2_ref) + bp2
    p_ref[...] = p.astype(p_ref.dtype)


# ----------------------------------------------------------------------------
# Parameter-side preparation (run once, outside the per-step hot path).
# ----------------------------------------------------------------------------
def prepare_params(params, hw):
    """Fold 1/(H*W) into w1, cast matmul weights to bf16, pack BN/bias rows."""
    C = params["w1"].shape[0]
    DIM = params["w3"].shape[1]
    PRED = params["wp1"].shape[1]
    maxw = max(C, DIM, PRED)

    def row(v):
        v = v.astype(jnp.float32)
        return jnp.pad(v, (0, maxw - v.shape[0]))

    vecs = jnp.stack([row(params["g1"]), row(params["b1"]),
                      row(params["g2"]), row(params["b2"]),
                      row(params["b3"]),
                      row(params["gp1"]), row(params["bp1"]),
                      row(params["bp2"])])               # (8, maxw) f32

    return dict(
        w1=(params["w1"] * (1.0 / float(hw))).astype(jnp.bfloat16),
        w2=params["w2"].astype(jnp.bfloat16),
        w3=params["w3"].astype(jnp.bfloat16),
        wp1=params["wp1"].astype(jnp.bfloat16),
        wp2=params["wp2"].astype(jnp.bfloat16),
        vecs=vecs,
    )


def _pick_tile_n(n, c, hw, budget_bytes=2 * _MIB):
    """Largest divisor of n whose [tile, C, HW] f32 block fits the budget."""
    per_row = c * hw * 4
    t = max(1, min(n, budget_bytes // max(per_row, 1)))
    while n % t:
        t -= 1
    return int(t)


def _vmem_limit(nbytes):
    # Clamp: at least the generous default, never above v7x's 64 MiB per TC.
    return int(min(max(nbytes, 32 * _MIB), 64 * _MIB))


# ----------------------------------------------------------------------------
# Forward wrapper: two pallas_calls (tiled pooling, then fused MLP/predictor).
# ----------------------------------------------------------------------------
def _simsiam_forward(x1_nchw, x2_nchw, prep):
    N, C, H, W = x1_nchw.shape
    HW = H * W
    DIM = prep["w3"].shape[1]
    PRED = prep["wp1"].shape[1]
    maxf = max(C, DIM, PRED)

    # Free reshapes (no transpose, no jnp.stack of the two big views).
    x1 = x1_nchw.reshape(N, C, HW)
    x2 = x2_nchw.reshape(N, C, HW)

    # --- stage 1: tiled global-average pooling -------------------------------
    tile_n = _pick_tile_n(N, C, HW)
    n_steps = N // tile_n
    pool_bytes = (2 * 2 * tile_n * C * HW * 4      # 2 inputs, double-buffered
                  + 2 * 2 * tile_n * C * 4         # output blocks
                  + 2 * _MIB)
    pooled = pl.pallas_call(
        _pool_kernel,
        out_shape=jax.ShapeDtypeStruct((2, N, C), jnp.float32),
        grid=(n_steps,),
        in_specs=[pl.BlockSpec((tile_n, C, HW), lambda i: (i, 0, 0)),
                  pl.BlockSpec((tile_n, C, HW), lambda i: (i, 0, 0))],
        out_specs=pl.BlockSpec((2, tile_n, C), lambda i: (0, i, 0)),
        compiler_params=pltpu.CompilerParams(
            dimension_semantics=("parallel",),
            vmem_limit_bytes=_vmem_limit(pool_bytes)),
        cost_estimate=pl.CostEstimate(
            flops=2 * N * C * HW, transcendentals=0,
            bytes_accessed=2 * N * C * HW * 4 + 2 * N * C * 4),
    )(x1, x2)

    # --- stage 2: fused projection MLP + predictor ---------------------------
    weight_bytes = 2 * (2 * C * C + C * DIM + 2 * DIM * PRED)     # bf16 weights
    io_bytes = 2 * N * C * 4 + 2 * (2 * N * DIM * 4) + 8 * maxf * 4
    act_bytes = 10 * (2 * N) * maxf * 4                           # live temporaries
    mm_flops = 2 * (2 * N) * (2 * C * C + C * DIM + 2 * DIM * PRED)
    z, p = pl.pallas_call(
        _mlp_kernel,
        out_shape=(jax.ShapeDtypeStruct((2, N, DIM), jnp.float32),
                   jax.ShapeDtypeStruct((2, N, DIM), jnp.float32)),
        compiler_params=pltpu.CompilerParams(
            vmem_limit_bytes=_vmem_limit(weight_bytes + io_bytes + act_bytes)),
        cost_estimate=pl.CostEstimate(
            flops=mm_flops,
            transcendentals=2 * (2 * C + DIM + PRED),
            bytes_accessed=weight_bytes + io_bytes),
    )(pooled, prep["w1"], prep["w2"], prep["w3"], prep["wp1"], prep["wp2"],
      prep["vecs"])

    p1, p2 = p[0], p[1]
    # ".detach()" in the reference: forward values identical, grads blocked.
    z1 = lax.stop_gradient(z[0])
    z2 = lax.stop_gradient(z[1])
    return p1, p2, z1, z2


simsiam_forward = jax.jit(_simsiam_forward)


# ----------------------------------------------------------------------------
# Main
# ----------------------------------------------------------------------------
if __name__ == "__main__":
    # Small shapes consistent with the module (defaults dim=2048, pred_dim=512).
    N, C, H, W = 2, 4, 16, 16     # batch, channels (== prev_dim), spatial
    DIM, PRED = 32, 16            # feature dim, predictor hidden dim

    key = jax.random.PRNGKey(0)
    ks = jax.random.split(key, 7)

    x1 = jax.random.normal(ks[0], (N, C, H, W), dtype=jnp.float32)
    x2 = jax.random.normal(ks[1], (N, C, H, W), dtype=jnp.float32)

    s = 0.1
    params = dict(
        # projection MLP (encoder.fc); BN gammas=1, betas=0 (PyTorch init)
        w1=jax.random.normal(ks[2], (C, C), jnp.float32) * s,
        g1=jnp.ones((C,), jnp.float32), b1=jnp.zeros((C,), jnp.float32),
        w2=jax.random.normal(ks[3], (C, C), jnp.float32) * s,
        g2=jnp.ones((C,), jnp.float32), b2=jnp.zeros((C,), jnp.float32),
        w3=jax.random.normal(ks[4], (C, DIM), jnp.float32) * s,
        b3=jnp.zeros((DIM,), jnp.float32),
        # predictor
        wp1=jax.random.normal(ks[5], (DIM, PRED), jnp.float32) * s,
        gp1=jnp.ones((PRED,), jnp.float32), bp1=jnp.zeros((PRED,), jnp.float32),
        wp2=jax.random.normal(ks[6], (PRED, DIM), jnp.float32) * s,
        bp2=jnp.zeros((DIM,), jnp.float32),
    )

    prep = prepare_params(params, H * W)    # one-time, outside the hot path
    p1, p2, z1, z2 = simsiam_forward(x1, x2, prep)
    jax.block_until_ready((p1, p2, z1, z2))

    assert p1.shape == (N, DIM) and p2.shape == (N, DIM)
    assert z1.shape == (N, DIM) and z2.shape == (N, DIM)
    assert bool(jnp.all(jnp.isfinite(p1))) and bool(jnp.all(jnp.isfinite(p2)))
    assert bool(jnp.all(jnp.isfinite(z1))) and bool(jnp.all(jnp.isfinite(z2)))
    print("KERNEL_OK")
</pallas_src>

<mosaic_0001>
module attributes {stable_mosaic.version = 11 : i64} {
  func.func @_pool_kernel(%arg0: i32, %arg1: memref<2x4x256xf32, #tpu.memory_space<vmem>>, %arg2: memref<2x4x256xf32, #tpu.memory_space<vmem>>, %arg3: memref<2x2x4xf32, #tpu.memory_space<vmem>>) attributes {dimension_semantics = [#tpu.dimension_semantics<parallel>], iteration_bounds = array<i64: 1>, scalar_prefetch = 0 : i64, scratch_operands = 0 : i64, tpu.core_type = #tpu.core_type<tc>, window_params = [{transform_indices = @transform_0, window_bounds = array<i64: 2, 4, 256>}, {transform_indices = @transform_1, window_bounds = array<i64: 2, 4, 256>}, {transform_indices = @transform_2, window_bounds = array<i64: 2, 2, 4>}]} {
    %c0 = arith.constant 0 : index
    %c0_0 = arith.constant 0 : index
    %c0_1 = arith.constant 0 : index
    %0 = vector.load %arg1[%c0, %c0_0, %c0_1] : memref<2x4x256xf32, #tpu.memory_space<vmem>>, vector<2x4x256xf32>
    %cst = arith.constant dense<0.000000e+00> : vector<2x4xf32>
    %1 = vector.multi_reduction <add>, %0, %cst [2] : vector<2x4x256xf32> to vector<2x4xf32>
    %c0_2 = arith.constant 0 : index
    %c0_3 = arith.constant 0 : index
    %c0_4 = arith.constant 0 : index
    %2 = vector.load %arg3[%c0_2, %c0_3, %c0_4] : memref<2x2x4xf32, #tpu.memory_space<vmem>>, vector<1x2x4xf32>
    %3 = vector.shape_cast %2 : vector<1x2x4xf32> to vector<2x4xf32>
    %4 = vector.shape_cast %1 : vector<2x4xf32> to vector<1x2x4xf32>
    tpu.vector_store %arg3[%c0_2, %c0_3, %c0_4], %4 {strides = array<i32>} : memref<2x2x4xf32, #tpu.memory_space<vmem>>, vector<1x2x4xf32>,
    %c0_5 = arith.constant 0 : index
    %c0_6 = arith.constant 0 : index
    %c0_7 = arith.constant 0 : index
    %5 = vector.load %arg2[%c0_5, %c0_6, %c0_7] : memref<2x4x256xf32, #tpu.memory_space<vmem>>, vector<2x4x256xf32>
    %cst_8 = arith.constant dense<0.000000e+00> : vector<2x4xf32>
    %6 = vector.multi_reduction <add>, %5, %cst_8 [2] : vector<2x4x256xf32> to vector<2x4xf32>
    %c1 = arith.constant 1 : index
    %c0_9 = arith.constant 0 : index
    %c0_10 = arith.constant 0 : index
    %7 = vector.load %arg3[%c1, %c0_9, %c0_10] : memref<2x2x4xf32, #tpu.memory_space<vmem>>, vector<1x2x4xf32>
    %8 = vector.shape_cast %7 : vector<1x2x4xf32> to vector<2x4xf32>
    %9 = vector.shape_cast %6 : vector<2x4xf32> to vector<1x2x4xf32>
    tpu.vector_store %arg3[%c1, %c0_9, %c0_10], %9 {strides = array<i32>} : memref<2x2x4xf32, #tpu.memory_space<vmem>>, vector<1x2x4xf32>,
    return
  }
  func.func @transform_0(%arg0: i32) -> (i32, i32, i32) {
    %c0_i32 = arith.constant 0 : i32
    %c0_i32_0 = arith.constant 0 : i32
    %c0_i32_1 = arith.constant 0 : i32
    return %arg0, %c0_i32, %c0_i32_0 : i32, i32, i32
  }
  func.func @transform_1(%arg0: i32) -> (i32, i32, i32) {
    %c0_i32 = arith.constant 0 : i32
    %c0_i32_0 = arith.constant 0 : i32
    %c0_i32_1 = arith.constant 0 : i32
    return %arg0, %c0_i32, %c0_i32_0 : i32, i32, i32
  }
  func.func @transform_2(%arg0: i32) -> (i32, i32, i32) {
    %c0_i32 = arith.constant 0 : i32
    %c0_i32_0 = arith.constant 0 : i32
    %c0_i32_1 = arith.constant 0 : i32
    return %c0_i32, %arg0, %c0_i32_0 : i32, i32, i32
  }
}

module attributes {stable_mosaic.version = 11 : i64} {
  func.func @_mlp_kernel(%arg0: memref<2x2x4xf32, #tpu.memory_space<vmem>>, %arg1: memref<4x4xbf16, #tpu.memory_space<vmem>>, %arg2: memref<4x4xbf16, #tpu.memory_space<vmem>>, %arg3: memref<4x32xbf16, #tpu.memory_space<vmem>>, %arg4: memref<32x16xbf16, #tpu.memory_space<vmem>>, %arg5: memref<16x32xbf16, #tpu.memory_space<vmem>>, %arg6: memref<8x32xf32, #tpu.memory_space<vmem>>, %arg7: memref<2x2x32xf32, #tpu.memory_space<vmem>>, %arg8: memref<2x2x32xf32, #tpu.memory_space<vmem>>) attributes {dimension_semantics = [], scalar_prefetch = 0 : i64, scratch_operands = 0 : i64, tpu.core_type = #tpu.core_type<tc>} {
    %c0 = arith.constant 0 : index
    %c0_0 = arith.constant 0 : index
    %0 = vector.load %arg6[%c0, %c0_0] : memref<8x32xf32, #tpu.memory_space<vmem>>, vector<8x32xf32>
    %1 = vector.extract_strided_slice %0 {offsets = [0, 0], sizes = [1, 4], strides = [1, 1]} : vector<8x32xf32> to vector<1x4xf32>
    %2 = vector.extract_strided_slice %0 {offsets = [1, 0], sizes = [1, 4], strides = [1, 1]} : vector<8x32xf32> to vector<1x4xf32>
    %3 = vector.extract_strided_slice %0 {offsets = [2, 0], sizes = [1, 4], strides = [1, 1]} : vector<8x32xf32> to vector<1x4xf32>
    %4 = vector.extract_strided_slice %0 {offsets = [3, 0], sizes = [1, 4], strides = [1, 1]} : vector<8x32xf32> to vector<1x4xf32>
    %5 = vector.extract_strided_slice %0 {offsets = [4, 0], sizes = [1, 32], strides = [1, 1]} : vector<8x32xf32> to vector<1x32xf32>
    %6 = vector.extract_strided_slice %0 {offsets = [5, 0], sizes = [1, 16], strides = [1, 1]} : vector<8x32xf32> to vector<1x16xf32>
    %7 = vector.extract_strided_slice %0 {offsets = [6, 0], sizes = [1, 16], strides = [1, 1]} : vector<8x32xf32> to vector<1x16xf32>
    %8 = vector.extract_strided_slice %0 {offsets = [7, 0], sizes = [1, 32], strides = [1, 1]} : vector<8x32xf32> to vector<1x32xf32>
    %c0_1 = arith.constant 0 : index
    %c0_2 = arith.constant 0 : index
    %c0_3 = arith.constant 0 : index
    %9 = vector.load %arg0[%c0_1, %c0_2, %c0_3] : memref<2x2x4xf32, #tpu.memory_space<vmem>>, vector<2x2x4xf32>
    %10 = vector.shape_cast %9 : vector<2x2x4xf32> to vector<4x4xf32>
    %11 = arith.truncf %10 : vector<4x4xf32> to vector<4x4xbf16>
    %c0_4 = arith.constant 0 : index
    %c0_5 = arith.constant 0 : index
    %12 = vector.load %arg1[%c0_4, %c0_5] : memref<4x4xbf16, #tpu.memory_space<vmem>>, vector<4x4xbf16>
    %cst = arith.constant dense<0.000000e+00> : vector<4x4xf32>
    %13 = tpu.matmul %11, %12, %cst {dimension_numbers = #tpu.dot_dimension_numbers<[1], [0], [0], [1], [0, 0, 1, 1], [], []>} : vector<4x4xbf16>, vector<4x4xbf16>, vector<4x4xf32> -> vector<4x4xf32>
    %14 = vector.shape_cast %13 : vector<4x4xf32> to vector<2x2x4xf32>
    %cst_6 = arith.constant dense<0.000000e+00> : vector<2x4xf32>
    %15 = vector.multi_reduction <add>, %14, %cst_6 [1] : vector<2x2x4xf32> to vector<2x4xf32>
    %16 = vector.shape_cast %15 : vector<2x4xf32> to vector<2x1x4xf32>
    %cst_7 = arith.constant 2.000000e+00 : f32
    %17 = vector.broadcast %cst_7 : f32 to vector<2x1x4xf32>
    %18 = arith.divf %16, %17 : vector<2x1x4xf32>
    %19 = vector.broadcast %18 : vector<2x1x4xf32> to vector<2x2x4xf32>
    %20 = arith.subf %14, %19 : vector<2x2x4xf32>
    %21 = arith.mulf %20, %20 : vector<2x2x4xf32>
    %cst_8 = arith.constant dense<0.000000e+00> : vector<2x4xf32>
    %22 = vector.multi_reduction <add>, %21, %cst_8 [1] : vector<2x2x4xf32> to vector<2x4xf32>
    %23 = vector.shape_cast %22 : vector<2x4xf32> to vector<2x1x4xf32>
    %cst_9 = arith.constant 2.000000e+00 : f32
    %24 = vector.broadcast %cst_9 : f32 to vector<2x1x4xf32>
    %25 = arith.divf %23, %24 : vector<2x1x4xf32>
    %26 = vector.broadcast %18 : vector<2x1x4xf32> to vector<2x2x4xf32>
    %27 = arith.subf %14, %26 : vector<2x2x4xf32>
    %cst_10 = arith.constant 9.99999974E-6 : f32
    %28 = vector.broadcast %cst_10 : f32 to vector<2x1x4xf32>
    %29 = arith.addf %25, %28 : vector<2x1x4xf32>
    %30 = math.rsqrt %29 : vector<2x1x4xf32>
    %31 = vector.broadcast %30 : vector<2x1x4xf32> to vector<2x2x4xf32>
    %32 = arith.mulf %27, %31 : vector<2x2x4xf32>
    %33 = vector.shape_cast %1 : vector<1x4xf32> to vector<1x1x4xf32>
    %34 = vector.broadcast %33 : vector<1x1x4xf32> to vector<2x2x4xf32>
    %35 = arith.mulf %32, %34 : vector<2x2x4xf32>
    %36 = vector.shape_cast %2 : vector<1x4xf32> to vector<1x1x4xf32>
    %37 = vector.broadcast %36 : vector<1x1x4xf32> to vector<2x2x4xf32>
    %38 = arith.addf %35, %37 : vector<2x2x4xf32>
    %cst_11 = arith.constant 0.000000e+00 : f32
    %39 = vector.broadcast %cst_11 : f32 to vector<2x2x4xf32>
    %40 = arith.maximumf %38, %39 : vector<2x2x4xf32>
    %41 = vector.shape_cast %40 : vector<2x2x4xf32> to vector<4x4xf32>
    %42 = arith.truncf %41 : vector<4x4xf32> to vector<4x4xbf16>
    %c0_12 = arith.constant 0 : index
    %c0_13 = arith.constant 0 : index
    %43 = vector.load %arg2[%c0_12, %c0_13] : memref<4x4xbf16, #tpu.memory_space<vmem>>, vector<4x4xbf16>
    %cst_14 = arith.constant dense<0.000000e+00> : vector<4x4xf32>
    %44 = tpu.matmul %42, %43, %cst_14 {dimension_numbers = #tpu.dot_dimension_numbers<[1], [0], [0], [1], [0, 0, 1, 1], [], []>} : vector<4x4xbf16>, vector<4x4xbf16>, vector<4x4xf32> -> vector<4x4xf32>
    %45 = vector.shape_cast %44 : vector<4x4xf32> to vector<2x2x4xf32>
    %cst_15 = arith.constant dense<0.000000e+00> : vector<2x4xf32>
    %46 = vector.multi_reduction <add>, %45, %cst_15 [1] : vector<2x2x4xf32> to vector<2x4xf32>
    %47 = vector.shape_cast %46 : vector<2x4xf32> to vector<2x1x4xf32>
    %cst_16 = arith.constant 2.000000e+00 : f32
    %48 = vector.broadcast %cst_16 : f32 to vector<2x1x4xf32>
    %49 = arith.divf %47, %48 : vector<2x1x4xf32>
    %50 = vector.broadcast %49 : vector<2x1x4xf32> to vector<2x2x4xf32>
    %51 = arith.subf %45, %50 : vector<2x2x4xf32>
    %52 = arith.mulf %51, %51 : vector<2x2x4xf32>
    %cst_17 = arith.constant dense<0.000000e+00> : vector<2x4xf32>
    %53 = vector.multi_reduction <add>, %52, %cst_17 [1] : vector<2x2x4xf32> to vector<2x4xf32>
    %54 = vector.shape_cast %53 : vector<2x4xf32> to vector<2x1x4xf32>
    %cst_18 = arith.constant 2.000000e+00 : f32
    %55 = vector.broadcast %cst_18 : f32 to vector<2x1x4xf32>
    %56 = arith.divf %54, %55 : vector<2x1x4xf32>
    %57 = vector.broadcast %49 : vector<2x1x4xf32> to vector<2x2x4xf32>
    %58 = arith.subf %45, %57 : vector<2x2x4xf32>
    %cst_19 = arith.constant 9.99999974E-6 : f32
    %59 = vector.broadcast %cst_19 : f32 to vector<2x1x4xf32>
    %60 = arith.addf %56, %59 : vector<2x1x4xf32>
    %61 = math.rsqrt %60 : vector<2x1x4xf32>
    %62 = vector.broadcast %61 : vector<2x1x4xf32> to vector<2x2x4xf32>
    %63 = arith.mulf %58, %62 : vector<2x2x4xf32>
    %64 = vector.shape_cast %3 : vector<1x4xf32> to vector<1x1x4xf32>
    %65 = vector.broadcast %64 : vector<1x1x4xf32> to vector<2x2x4xf32>
    %66 = arith.mulf %63, %65 : vector<2x2x4xf32>
    %67 = vector.shape_cast %4 : vector<1x4xf32> to vector<1x1x4xf32>
    %68 = vector.broadcast %67 : vector<1x1x4xf32> to vector<2x2x4xf32>
    %69 = arith.addf %66, %68 : vector<2x2x4xf32>
    %cst_20 = arith.constant 0.000000e+00 : f32
    %70 = vector.broadcast %cst_20 : f32 to vector<2x2x4xf32>
    %71 = arith.maximumf %69, %70 : vector<2x2x4xf32>
    %72 = vector.shape_cast %71 : vector<2x2x4xf32> to vector<4x4xf32>
    %73 = arith.truncf %72 : vector<4x4xf32> to vector<4x4xbf16>
    %c0_21 = arith.constant 0 : index
    %c0_22 = arith.constant 0 : index
    %74 = vector.load %arg3[%c0_21, %c0_22] : memref<4x32xbf16, #tpu.memory_space<vmem>>, vector<4x32xbf16>
    %cst_23 = arith.constant dense<0.000000e+00> : vector<4x32xf32>
    %75 = tpu.matmul %73, %74, %cst_23 {dimension_numbers = #tpu.dot_dimension_numbers<[1], [0], [0], [1], [0, 0, 1, 1], [], []>} : vector<4x4xbf16>, vector<4x32xbf16>, vector<4x32xf32> -> vector<4x32xf32>
    %76 = vector.shape_cast %75 : vector<4x32xf32> to vector<2x2x32xf32>
    %77 = vector.shape_cast %5 : vector<1x32xf32> to vector<1x1x32xf32>
    %78 = vector.broadcast %77 : vector<1x1x32xf32> to vector<2x2x32xf32>
    %79 = arith.addf %76, %78 : vector<2x2x32xf32>
    %cst_24 = arith.constant dense<0.000000e+00> : vector<2x32xf32>
    %80 = vector.multi_reduction <add>, %79, %cst_24 [1] : vector<2x2x32xf32> to vector<2x32xf32>
    %81 = vector.shape_cast %80 : vector<2x32xf32> to vector<2x1x32xf32>
    %cst_25 = arith.constant 2.000000e+00 : f32
    %82 = vector.broadcast %cst_25 : f32 to vector<2x1x32xf32>
    %83 = arith.divf %81, %82 : vector<2x1x32xf32>
    %84 = vector.broadcast %83 : vector<2x1x32xf32> to vector<2x2x32xf32>
    %85 = arith.subf %79, %84 : vector<2x2x32xf32>
    %86 = arith.mulf %85, %85 : vector<2x2x32xf32>
    %cst_26 = arith.constant dense<0.000000e+00> : vector<2x32xf32>
    %87 = vector.multi_reduction <add>, %86, %cst_26 [1] : vector<2x2x32xf32> to vector<2x32xf32>
    %88 = vector.shape_cast %87 : vector<2x32xf32> to vector<2x1x32xf32>
    %cst_27 = arith.constant 2.000000e+00 : f32
    %89 = vector.broadcast %cst_27 : f32 to vector<2x1x32xf32>
    %90 = arith.divf %88, %89 : vector<2x1x32xf32>
    %91 = vector.broadcast %83 : vector<2x1x32xf32> to vector<2x2x32xf32>
    %92 = arith.subf %79, %91 : vector<2x2x32xf32>
    %cst_28 = arith.constant 9.99999974E-6 : f32
    %93 = vector.broadcast %cst_28 : f32 to vector<2x1x32xf32>
    %94 = arith.addf %90, %93 : vector<2x1x32xf32>
    %95 = math.rsqrt %94 : vector<2x1x32xf32>
    %96 = vector.broadcast %95 : vector<2x1x32xf32> to vector<2x2x32xf32>
    %97 = arith.mulf %92, %96 : vector<2x2x32xf32>
    %c0_29 = arith.constant 0 : index
    %c0_30 = arith.constant 0 : index
    %c0_31 = arith.constant 0 : index
    %98 = vector.load %arg7[%c0_29, %c0_30, %c0_31] : memref<2x2x32xf32, #tpu.memory_space<vmem>>, vector<2x2x32xf32>
    tpu.vector_store %arg7[%c0_29, %c0_30, %c0_31], %97 {strides = array<i32>} : memref<2x2x32xf32, #tpu.memory_space<vmem>>, vector<2x2x32xf32>,
    %99 = vector.shape_cast %97 : vector<2x2x32xf32> to vector<4x32xf32>
    %100 = arith.truncf %99 : vector<4x32xf32> to vector<4x32xbf16>
    %c0_32 = arith.constant 0 : index
    %c0_33 = arith.constant 0 : index
    %101 = vector.load %arg4[%c0_32, %c0_33] : memref<32x16xbf16, #tpu.memory_space<vmem>>, vector<32x16xbf16>
    %cst_34 = arith.constant dense<0.000000e+00> : vector<4x16xf32>
    %102 = tpu.matmul %100, %101, %cst_34 {dimension_numbers = #tpu.dot_dimension_numbers<[1], [0], [0], [1], [0, 0, 1, 1], [], []>} : vector<4x32xbf16>, vector<32x16xbf16>, vector<4x16xf32> -> vector<4x16xf32>
    %103 = vector.shape_cast %102 : vector<4x16xf32> to vector<2x2x16xf32>
    %cst_35 = arith.constant dense<0.000000e+00> : vector<2x16xf32>
    %104 = vector.multi_reduction <add>, %103, %cst_35 [1] : vector<2x2x16xf32> to vector<2x16xf32>
    %105 = vector.shape_cast %104 : vector<2x16xf32> to vector<2x1x16xf32>
    %cst_36 = arith.constant 2.000000e+00 : f32
    %106 = vector.broadcast %cst_36 : f32 to vector<2x1x16xf32>
    %107 = arith.divf %105, %106 : vector<2x1x16xf32>
    %108 = vector.broadcast %107 : vector<2x1x16xf32> to vector<2x2x16xf32>
    %109 = arith.subf %103, %108 : vector<2x2x16xf32>
    %110 = arith.mulf %109, %109 : vector<2x2x16xf32>
    %cst_37 = arith.constant dense<0.000000e+00> : vector<2x16xf32>
    %111 = vector.multi_reduction <add>, %110, %cst_37 [1] : vector<2x2x16xf32> to vector<2x16xf32>
    %112 = vector.shape_cast %111 : vector<2x16xf32> to vector<2x1x16xf32>
    %cst_38 = arith.constant 2.000000e+00 : f32
    %113 = vector.broadcast %cst_38 : f32 to vector<2x1x16xf32>
    %114 = arith.divf %112, %113 : vector<2x1x16xf32>
    %115 = vector.broadcast %107 : vector<2x1x16xf32> to vector<2x2x16xf32>
    %116 = arith.subf %103, %115 : vector<2x2x16xf32>
    %cst_39 = arith.constant 9.99999974E-6 : f32
    %117 = vector.broadcast %cst_39 : f32 to vector<2x1x16xf32>
    %118 = arith.addf %114, %117 : vector<2x1x16xf32>
    %119 = math.rsqrt %118 : vector<2x1x16xf32>
    %120 = vector.broadcast %119 : vector<2x1x16xf32> to vector<2x2x16xf32>
    %121 = arith.mulf %116, %120 : vector<2x2x16xf32>
    %122 = vector.shape_cast %6 : vector<1x16xf32> to vector<1x1x16xf32>
    %123 = vector.broadcast %122 : vector<1x1x16xf32> to vector<2x2x16xf32>
    %124 = arith.mulf %121, %123 : vector<2x2x16xf32>
    %125 = vector.shape_cast %7 : vector<1x16xf32> to vector<1x1x16xf32>
    %126 = vector.broadcast %125 : vector<1x1x16xf32> to vector<2x2x16xf32>
    %127 = arith.addf %124, %126 : vector<2x2x16xf32>
    %cst_40 = arith.constant 0.000000e+00 : f32
    %128 = vector.broadcast %cst_40 : f32 to vector<2x2x16xf32>
    %129 = arith.maximumf %127, %128 : vector<2x2x16xf32>
    %130 = vector.shape_cast %129 : vector<2x2x16xf32> to vector<4x16xf32>
    %131 = arith.truncf %130 : vector<4x16xf32> to vector<4x16xbf16>
    %c0_41 = arith.constant 0 : index
    %c0_42 = arith.constant 0 : index
    %132 = vector.load %arg5[%c0_41, %c0_42] : memref<16x32xbf16, #tpu.memory_space<vmem>>, vector<16x32xbf16>
    %cst_43 = arith.constant dense<0.000000e+00> : vector<4x32xf32>
    %133 = tpu.matmul %131, %132, %cst_43 {dimension_numbers = #tpu.dot_dimension_numbers<[1], [0], [0], [1], [0, 0, 1, 1], [], []>} : vector<4x16xbf16>, vector<16x32xbf16>, vector<4x32xf32> -> vector<4x32xf32>
    %134 = vector.shape_cast %133 : vector<4x32xf32> to vector<2x2x32xf32>
    %135 = vector.shape_cast %8 : vector<1x32xf32> to vector<1x1x32xf32>
    %136 = vector.broadcast %135 : vector<1x1x32xf32> to vector<2x2x32xf32>
    %137 = arith.addf %134, %136 : vector<2x2x32xf32>
    %c0_44 = arith.constant 0 : index
    %c0_45 = arith.constant 0 : index
    %c0_46 = arith.constant 0 : index
    %138 = vector.load %arg8[%c0_44, %c0_45, %c0_46] : memref<2x2x32xf32, #tpu.memory_space<vmem>>, vector<2x2x32xf32>
    tpu.vector_store %arg8[%c0_44, %c0_45, %c0_46], %137 {strides = array<i32>} : memref<2x2x32xf32, #tpu.memory_space<vmem>>, vector<2x2x32xf32>,
    return
  }
}

</mosaic_0001>

<bundles_post_ra>
// kernel: _simsiam_forward.2
= control target key start
LH: loop header
LB: loop body
LE: loop exit
PB: predicated region body
PF: predicated region fallthrough
CT: control target
= control target key end

     0   :  { %vm19_vm0 = vcmask 1043456   ;;  %v32_v20 = vlaneseq  ;;  %vm42_vm1 = vcmask 1041409   ;;  %vm45_vm2 = vcmask 25600   ;;  %s129_s1 = inlined_call_operand.vmem [shape: f32[2,4,256], index: 1, kind: input, shape index: {}]   ;;  %s130_s0 = inlined_call_operand.vmem [shape: f32[2,4,256], index: 0, kind: input, shape index: {}]   ;;  %s131_s2 = inlined_call_operand.vmem [shape: f32[2,2,4], index: 2, kind: output, shape index: {}]  }
   0x1   :  { %v47_v0 = vld [vmem:[%s129_s1] sm:$0xff]  ;;  %v48_v2 = vld [vmem:[%s129_s1 + $0x8] sm:$0xff] }
   0x2   :  { %v11_v1 = vld [vmem:[%s130_s0] sm:$0xff]  ;;  %v51_v3 = vcombine.high %v47_v0, %v47_v0  ;;  %v55_v4 = vsel %vm19_vm0, %v47_v0, 0.0  ;;  %v12_v7 = vld [vmem:[%s130_s0 + $0x8] sm:$0xff]  ;;  %v52_v8 = vcombine.high %v48_v2, %v48_v2  ;;  %v60_v12 = vsel %vm19_vm0, %v48_v2, 0.0 }
   0x3   :  { %v15_v5 = vcombine.high %v11_v1, %v11_v1  ;;  %v20_v6 = vsel %vm19_vm0, %v11_v1, 0.0  ;;  %v16_v9 = vcombine.high %v12_v7, %v12_v7  ;;  %v25_v13 = vsel %vm19_vm0, %v12_v7, 0.0 }
   0x4   :  { %v56_v10 = vsel %vm19_vm0, %v51_v3, 0.0  ;;  %v61_v16 = vsel %vm19_vm0, %v52_v8, 0.0  ;;  %v33_v21 = vand.u32 127, %v32_v20  ;;  %v35_v22 = vshrl.u32 %v32_v20, 7 }
   0x5   :  { %v21_v11 = vsel %vm19_vm0, %v15_v5, 0.0  ;;  %v57_v14 = vadd.f32 %v56_v10, %v55_v4  ;;  %v26_v17 = vsel %vm19_vm0, %v16_v9, 0.0  ;;  %v62_v18 = vadd.f32 %v61_v16, %v60_v12 }
   0x6   :  { %v22_v15 = vadd.f32 %v21_v11, %v20_v6  ;;  %v27_v19 = vadd.f32 %v26_v17, %v25_v13  ;;  %v36_v25 = vsub.s32 %v33_v21, %v35_v22 }
   0x7   :  { %58 = vadd.xlane.f32.xlu1 %v57_v14 }
   0x8   :  { %23 = vadd.xlane.f32.xlu0 %v22_v15 }
   0xb   :  { %63 = vadd.xlane.f32.xlu1 %v62_v18 }
   0xc   :  { %28 = vadd.xlane.f32.xlu0 %v27_v19 }
  0x94   :  { %v59_v23 = vpop.xlane.xlu1 %58 }
  0x95   :  { %v24_v24 = vpop.xlane.xlu0 %23  ;;  %v70_v28 = vrot.slane %v59_v23, %v36_v25 }
  0x96   :  { %v37_v29 = vrot.slane %v24_v24, %v36_v25 }
  0x98   :  { %v64_v26 = vpop.xlane.xlu1 %63 }
  0x99   :  { %v29_v27 = vpop.xlane.xlu0 %28  ;;  %v74_v30 = vrot.slane %v64_v26, %v36_v25 }
  0x9a   :  { %v41_v31 = vrot.slane %v29_v27, %v36_v25 }
  0x9b   :  { %v75_v32 = vsel %vm42_vm1, %v74_v30, %v70_v28 }
  0x9c   :  { %v43_v33 = vsel %vm42_vm1, %v41_v31, %v37_v29  ;;  %83 = vst.msk [vmem:[%s131_s2 + $0x2] sm:$0x3] %vm45_vm2, %v75_v32 }
  0x9d   :  { %46 = vst.msk [vmem:[%s131_s2] sm:$0x3] %vm45_vm2, %v43_v33 }

// kernel: _simsiam_forward.3
= control target key start
LH: loop header
LB: loop body
LE: loop exit
PB: predicated region body
PF: predicated region fallthrough
CT: control target
= control target key end

     0   :  { %vm49_vm0 = vcmask 1041408   ;;  %v713_v0 = vmov 0.0   ;;  %vm714_vm1 = vmmov 0   ;;  %v715_v4 = vmov 1983009808   ;;  %s875_s1 = inlined_call_operand.vmem [shape: bf16[4,4], index: 1, kind: input, shape index: {}]   ;;  %s876_s0 = inlined_call_operand.vmem [shape: f32[2,2,4], index: 0, kind: input, shape index: {}]   ;;  %s877_s2 = inlined_call_operand.vmem [shape: bf16[4,4], index: 2, kind: input, shape index: {}]   ;;  %s878_s6 = inlined_call_operand.vmem [shape: f32[8,32], index: 6, kind: input, shape index: {}]   ;;  %s879_s3 = inlined_call_operand.vmem [shape: bf16[4,32], index: 3, kind: input, shape index: {}]   ;;  %s880_s4 = inlined_call_operand.vmem [shape: bf16[32,16], index: 4, kind: input, shape index: {}]   ;;  %s881_s7 = inlined_call_operand.vmem [shape: f32[2,2,32], index: 7, kind: output, shape index: {0}]   ;;  %s882_s5 = inlined_call_operand.vmem [shape: bf16[16,32], index: 5, kind: input, shape index: {}]   ;;  %s883_s8 = inlined_call_operand.vmem [shape: f32[2,2,32], index: 8, kind: output, shape index: {1}]  }
   0x1   :  { %659 = vmatprep.subr.bf16.mxu0 %v713_v0  ;;  %v44_v1 = vld [vmem:[%s875_s1] sm:$0x3]  ;;  %661 = vmatprep.mubr.msk.bf16.mxu0 %vm714_vm1, %v713_v0  ;;  %v31_v3 = vld [vmem:[%s876_s0 + $0x2] sm:$0x3]  ;;  %v36_v5 = vunpack.c.l.s4 %v715_v4  ;;  %v38_v6 = vlaneseq  ;;  %vm45_vm2 = vcmask 31744   ;;  %vm104_vm3 = vcmask 25600  }
   0x2   :  { %v30_v2 = vld [vmem:[%s876_s0] sm:$0x3]  ;;  %v51_v7 = vsel %vm49_vm0, %v44_v1, 0  ;;  %665 = vmatprep.subr.bf16.mxu1 %v713_v0  ;;  %667 = vmatprep.mubr.msk.bf16.mxu1 %vm714_vm1, %v713_v0  ;;  %vm364_vm4 = vcmask 254976   ;;  %vm437_vm5 = vcmask 261120   ;;  %vm492_vm6 = vcmask 123904  }
   0x3   :  { %660 = vmatpush3.bf16.msra.mxu0 %v51_v7  ;;  %v34_v8 = vcombine.low %v30_v2, %v31_v3  ;;  %v37_v9 = vunpack.c.0.s8 %v36_v5  ;;  %v777_v10 = vshrl.u32 %v38_v6, 7  ;;  %v174_v14 = vld [vmem:[%s877_s2] sm:$0x3]  ;;  %vm569_vm7 = vcmask 130048  }
   0x4   :  { %671 = vmatprep.subr.bf16.mxu0 %v713_v0  ;;  %v179_v15 = vsel %vm49_vm0, %v174_v14, 0  ;;  %v801_v61 = vld [vmem:[%s878_s6] sm:$0xff] }
   0x5   :  { %v781_v11 = vsub.s32 %v37_v9, %v777_v10  ;;  %666 = vmatpush3.bf16.msra.mxu1 %v179_v15  ;;  %v150_v60 = vsub.s32 0, %v777_v10  ;;  %v156_v62 = vsub.s32 1, %v777_v10 }
   0x6   :  { %677 = vmatprep.subr.bf16.mxu1 %v713_v0 }
   0x7   :  { %v41_v12 = vrot.slane %v34_v8, %v781_v11  ;;  %v151_v63 = vrot.slane %v801_v61, %v150_v60  ;;  %v157_v3 = vrot.slane %v801_v61, %v156_v62 }
   0x9   :  { %v43_v13 = vpack.c.bf16 %v41_v12, %v41_v12 }
   0xb   :  { %662 = vmatmul.mubr.msk.bf16.vlgmr.msra.gmra.mrb[0].mxu0 %vm45_vm2, %v43_v13 }
   0xc   :  { %673 = vmatprep.mubr.msk.bf16.mxu0 %vm714_vm1, %v713_v0 }
  0xde   :  { %v87_v16 = vpop.f32.mrb[0].mxu0 }
  0xdf   :  { %v100_v17 = vrot.slane %v87_v16, %v781_v11  ;;  %v663_v18 = vpop.f32.mrb[1].mxu0 }
  0xe0   :  { %v90_v19 = vpop.f32.mrb[2].mxu0 }
  0xe1   :  { %v101_v20 = vcombine.high %v100_v17, %v100_v17  ;;  %v105_v21 = vsel %vm104_vm3, %v100_v17, 0.0  ;;  %v664_v22 = vpop.f32.mrb[3].mxu0 }
  0xe2   :  { %v106_v23 = vrot.slane %v105_v21, 4 }
  0xe3   :  { %v112_v24 = vsel %vm104_vm3, %v101_v20, 0.0 }
  0xe4   :  { %v107_v25 = vadd.f32 %v106_v23, %v105_v21  ;;  %v113_v26 = vrot.slane %v112_v24, 4 }
  0xe6   :  { %v108_v27 = vrot.slane %v107_v25, 2  ;;  %v114_v28 = vadd.f32 %v113_v26, %v112_v24 }
  0xe8   :  { %v109_v29 = vadd.f32 %v108_v27, %v107_v25  ;;  %v115_v30 = vrot.slane %v114_v28, 2 }
  0xea   :  { %v110_v31 = vrot.slane %v109_v29, 1  ;;  %v116_v32 = vadd.f32 %v115_v30, %v114_v28 }
  0xec   :  { %v111_v33 = vadd.f32 %v110_v31, %v109_v29  ;;  %v117_v34 = vrot.slane %v116_v32, 1 }
  0xee   :  { %v118_v35 = vadd.f32 %v117_v34, %v116_v32  ;;  %v120_v36 = vmul.f32 0.5, %v111_v33 }
  0xf0   :  { %v121_v37 = vmul.f32 0.5, %v118_v35  ;;  %v122_v38 = vsub.f32 %v100_v17, %v120_v36  ;;  %v300_v17 = vld [vmem:[%s879_s3] sm:$0x3] }
  0xf1   :  { %v305_v18 = vsel %vm49_vm0, %v300_v17, 0 }
  0xf2   :  { %v123_v39 = vsub.f32 %v101_v20, %v121_v37  ;;  %v124_v40 = vmul.f32 %v122_v38, %v122_v38  ;;  %672 = vmatpush3.bf16.msra.mxu0 %v305_v18 }
  0xf3   :  { %685 = vmatprep.subr.bf16.mxu0 %v713_v0 }
  0xf4   :  { %v125_v41 = vmul.f32 %v123_v39, %v123_v39  ;;  %v126_v42 = vsel %vm104_vm3, %v124_v40, 0.0 }
  0xf5   :  { %v127_v43 = vrot.slane %v126_v42, 4 }
  0xf6   :  { %v133_v44 = vsel %vm104_vm3, %v125_v41, 0.0 }
  0xf7   :  { %v128_v45 = vadd.f32 %v127_v43, %v126_v42  ;;  %v134_v46 = vrot.slane %v133_v44, 4 }
  0xf9   :  { %v129_v47 = vrot.slane %v128_v45, 2  ;;  %v135_v48 = vadd.f32 %v134_v46, %v133_v44 }
  0xfb   :  { %v130_v49 = vadd.f32 %v129_v47, %v128_v45  ;;  %v136_v50 = vrot.slane %v135_v48, 2 }
  0xfd   :  { %v131_v51 = vrot.slane %v130_v49, 1  ;;  %v137_v52 = vadd.f32 %v136_v50, %v135_v48 }
  0xff   :  { %v132_v53 = vadd.f32 %v131_v51, %v130_v49  ;;  %v138_v54 = vrot.slane %v137_v52, 1 }
 0x101   :  { %v139_v55 = vadd.f32 %v138_v54, %v137_v52  ;;  %v140_v56 = vmul.f32 0.5, %v132_v53 }
 0x103   :  { %v141_v57 = vmul.f32 0.5, %v139_v55  ;;  %v142_v58 = vadd.f32 1e-05, %v140_v56 }
 0x105   :  { %v143_v59 = vadd.f32 1e-05, %v141_v57  ;;  %697 = vrsqrt.f32 %v142_v58 }
 0x107   :  { %699 = vrsqrt.f32 %v143_v59 }
 0x10f   :  { %v698_v1 = vpop.eup %697 }
 0x110   :  { %v146_v2 = vmul.f32 %v698_v1, %v122_v38  ;;  %v276_v1 = vsub.s32 2, %v777_v10 }
 0x111   :  { %v700_v4 = vpop.eup %699 }
 0x112   :  { %v147_v5 = vmul.f32 %v700_v4, %v123_v39  ;;  %v152_v6 = vmul.f32 %v151_v63, %v146_v2  ;;  %v282_v2 = vsub.s32 3, %v777_v10 }
 0x114   :  { %v153_v7 = vmul.f32 %v151_v63, %v147_v5  ;;  %v158_v8 = vadd.f32 %v157_v3, %v152_v6  ;;  %v283_v6 = vrot.slane %v801_v61, %v282_v2 }
 0x116   :  { %v159_v9 = vadd.f32 %v157_v3, %v153_v7  ;;  %v160_v12 = vmax.f32 %v158_v8, 0.0  ;;  %v277_v3 = vrot.slane %v801_v61, %v276_v1 }
 0x118   :  { %v161_v13 = vmax.f32 %v159_v9, 0.0 }
 0x11a   :  { %v164_v14 = vcombine.low %v160_v12, %v161_v13 }
 0x11c   :  { %v171_v15 = vrot.slane %v164_v14, %v781_v11 }
 0x11e   :  { %v173_v16 = vpack.c.bf16 %v171_v15, %v171_v15 }
 0x120   :  { %668 = vmatmul.mubr.msk.bf16.vlgmr.msra.gmra.mrb[0].mxu1 %vm45_vm2, %v173_v16 }
 0x121   :  { %681 = vmatprep.mubr.msk.bf16.mxu1 %vm714_vm1, %v713_v0 }
 0x1f3   :  { %v215_v19 = vpop.f32.mrb[0].mxu1 }
 0x1f4   :  { %v228_v20 = vrot.slane %v215_v19, %v781_v11  ;;  %v669_v21 = vpop.f32.mrb[1].mxu1 }
 0x1f5   :  { %v218_v22 = vpop.f32.mrb[2].mxu1  ;;  %v695_v21 = vld [vmem:[%s880_s4 + $0x8] sm:$0xff]  }
 0x1f6   :  { %v229_v23 = vcombine.high %v228_v20, %v228_v20  ;;  %v232_v24 = vsel %vm104_vm3, %v228_v20, 0.0  ;;  %v670_v25 = vpop.f32.mrb[3].mxu1  ;;  %v360_v22 = vsub.s32 4, %v777_v10 }
 0x1f7   :  { %v233_v26 = vrot.slane %v232_v24, 4 }
 0x1f8   :  { %v239_v27 = vsel %vm104_vm3, %v229_v23, 0.0 }
 0x1f9   :  { %v234_v28 = vadd.f32 %v233_v26, %v232_v24  ;;  %v240_v29 = vrot.slane %v239_v27, 4 }
 0x1fb   :  { %v235_v30 = vrot.slane %v234_v28, 2  ;;  %v241_v31 = vadd.f32 %v240_v29, %v239_v27 }
 0x1fd   :  { %v236_v32 = vadd.f32 %v235_v30, %v234_v28  ;;  %v242_v33 = vrot.slane %v241_v31, 2 }
 0x1ff   :  { %v237_v34 = vrot.slane %v236_v32, 1  ;;  %v243_v35 = vadd.f32 %v242_v33, %v241_v31 }
 0x201   :  { %v238_v36 = vadd.f32 %v237_v34, %v236_v32  ;;  %v244_v37 = vrot.slane %v243_v35, 1 }
 0x203   :  { %v245_v38 = vadd.f32 %v244_v37, %v243_v35  ;;  %v246_v39 = vmul.f32 0.5, %v238_v36 }
 0x205   :  { %v247_v40 = vmul.f32 0.5, %v245_v38  ;;  %v248_v41 = vsub.f32 %v228_v20, %v246_v39  ;;  %v694_v20 = vld [vmem:[%s880_s4] sm:$0xff]  }
 0x206   :  { %678 = vmatpush3.bf16.msra.mxu1 %v694_v20 }
 0x207   :  { %v249_v42 = vsub.f32 %v229_v23, %v247_v40  ;;  %v250_v43 = vmul.f32 %v248_v41, %v248_v41  ;;  %679 = vmatprep.subr.bf16.mxu1 %v713_v0  ;;  %v361_v23 = vrot.slane %v801_v61, %v360_v22 }
 0x209   :  { %v251_v44 = vmul.f32 %v249_v42, %v249_v42  ;;  %v252_v45 = vsel %vm104_vm3, %v250_v43, 0.0 }
 0x20a   :  { %v253_v46 = vrot.slane %v252_v45, 4  ;;  %680 = vmatpush3.bf16.msra.mxu1 %v695_v21 }
 0x20b   :  { %v259_v47 = vsel %vm104_vm3, %v251_v44, 0.0 }
 0x20c   :  { %v254_v48 = vadd.f32 %v253_v46, %v252_v45  ;;  %v260_v49 = vrot.slane %v259_v47, 4 }
 0x20e   :  { %v255_v50 = vrot.slane %v254_v48, 2  ;;  %v261_v51 = vadd.f32 %v260_v49, %v259_v47 }
 0x210   :  { %v256_v52 = vadd.f32 %v255_v50, %v254_v48  ;;  %v262_v53 = vrot.slane %v261_v51, 2 }
 0x212   :  { %v257_v54 = vrot.slane %v256_v52, 1  ;;  %v263_v55 = vadd.f32 %v262_v53, %v261_v51 }
 0x214   :  { %v258_v56 = vadd.f32 %v257_v54, %v256_v52  ;;  %v264_v57 = vrot.slane %v263_v55, 1 }
 0x216   :  { %v265_v58 = vadd.f32 %v264_v57, %v263_v55  ;;  %v266_v59 = vmul.f32 0.5, %v258_v56 }
 0x218   :  { %v267_v60 = vmul.f32 0.5, %v265_v58  ;;  %v268_v62 = vadd.f32 1e-05, %v266_v59 }
 0x21a   :  { %v269_v63 = vadd.f32 1e-05, %v267_v60  ;;  %701 = vrsqrt.f32 %v268_v62 }
 0x21c   :  { %703 = vrsqrt.f32 %v269_v63 }
 0x224   :  { %v702_v4 = vpop.eup %701 }
 0x225   :  { %v272_v5 = vmul.f32 %v702_v4, %v248_v41 }
 0x226   :  { %v704_v7 = vpop.eup %703 }
 0x227   :  { %v273_v8 = vmul.f32 %v704_v7, %v249_v42  ;;  %v278_v9 = vmul.f32 %v277_v3, %v272_v5 }
 0x229   :  { %v279_v12 = vmul.f32 %v277_v3, %v273_v8  ;;  %v284_v13 = vadd.f32 %v283_v6, %v278_v9 }
 0x22b   :  { %v285_v14 = vadd.f32 %v283_v6, %v279_v12  ;;  %v286_v15 = vmax.f32 %v284_v13, 0.0 }
 0x22d   :  { %v287_v16 = vmax.f32 %v285_v14, 0.0 }
 0x22f   :  { %v290_v17 = vcombine.low %v286_v15, %v287_v16  ;;  %v696_v16 = vld [vmem:[%s882_s5] sm:$0xff]  }
 0x231   :  { %v297_v18 = vrot.slane %v290_v17, %v781_v11 }
 0x233   :  { %v299_v19 = vpack.c.bf16 %v297_v18, %v297_v18 }
 0x235   :  { %674 = vmatmul.mubr.msk.bf16.vlgmr.msra.gmra.mrb[4].mxu0 %vm45_vm2, %v299_v19 }
 0x236   :  { %687 = vmatprep.mubr.msk.bf16.mxu0 %vm714_vm1, %v713_v0  ;;  %686 = vmatpush3.bf16.msra.mxu0 %v696_v16 }
 0x308   :  { %v341_v24 = vpop.f32.mrb[4].mxu0 }
 0x309   :  { %v354_v25 = vrot.slane %v341_v24, %v781_v11  ;;  %v675_v26 = vpop.f32.mrb[5].mxu0 }
 0x30a   :  { %v344_v27 = vpop.f32.mrb[6].mxu0 }
 0x30b   :  { %v355_v28 = vcombine.high %v354_v25, %v354_v25  ;;  %v362_v29 = vadd.f32 %v361_v23, %v354_v25  ;;  %v676_v30 = vpop.f32.mrb[7].mxu0 }
 0x30d   :  { %v363_v31 = vadd.f32 %v361_v23, %v355_v28  ;;  %v365_v0 = vsel %vm364_vm4, %v362_v29, 0.0 }
 0x30e   :  { %v366_v32 = vrot.slane %v365_v0, 4 }
 0x30f   :  { %v372_v33 = vsel %vm364_vm4, %v363_v31, 0.0 }
 0x310   :  { %v367_v34 = vadd.f32 %v366_v32, %v365_v0  ;;  %v373_v35 = vrot.slane %v372_v33, 4 }
 0x312   :  { %v368_v36 = vrot.slane %v367_v34, 2  ;;  %v374_v37 = vadd.f32 %v373_v35, %v372_v33 }
 0x314   :  { %v369_v38 = vadd.f32 %v368_v36, %v367_v34  ;;  %v375_v39 = vrot.slane %v374_v37, 2 }
 0x316   :  { %v370_v40 = vrot.slane %v369_v38, 1  ;;  %v376_v41 = vadd.f32 %v375_v39, %v374_v37 }
 0x318   :  { %v371_v42 = vadd.f32 %v370_v40, %v369_v38  ;;  %v377_v43 = vrot.slane %v376_v41, 1 }
 0x31a   :  { %v378_v44 = vadd.f32 %v377_v43, %v376_v41  ;;  %v379_v45 = vmul.f32 0.5, %v371_v42 }
 0x31c   :  { %v380_v46 = vmul.f32 0.5, %v378_v44  ;;  %v381_v47 = vsub.f32 %v362_v29, %v379_v45 }
 0x31e   :  { %v382_v48 = vsub.f32 %v363_v31, %v380_v46  ;;  %v383_v49 = vmul.f32 %v381_v47, %v381_v47 }
 0x320   :  { %v384_v50 = vmul.f32 %v382_v48, %v382_v48  ;;  %v385_v51 = vsel %vm364_vm4, %v383_v49, 0.0 }
 0x321   :  { %v386_v52 = vrot.slane %v385_v51, 4 }
 0x322   :  { %v392_v53 = vsel %vm364_vm4, %v384_v50, 0.0 }
 0x323   :  { %v387_v54 = vadd.f32 %v386_v52, %v385_v51  ;;  %v393_v55 = vrot.slane %v392_v53, 4 }
 0x325   :  { %v388_v56 = vrot.slane %v387_v54, 2  ;;  %v394_v57 = vadd.f32 %v393_v55, %v392_v53 }
 0x327   :  { %v389_v58 = vadd.f32 %v388_v56, %v387_v54  ;;  %v395_v59 = vrot.slane %v394_v57, 2 }
 0x329   :  { %v390_v60 = vrot.slane %v389_v58, 1  ;;  %v396_v62 = vadd.f32 %v395_v59, %v394_v57 }
 0x32b   :  { %v391_v63 = vadd.f32 %v390_v60, %v389_v58  ;;  %v397_v1 = vrot.slane %v396_v62, 1  ;;  %v537_v60 = vsub.s32 5, %v777_v10 }
 0x32d   :  { %v398_v2 = vadd.f32 %v397_v1, %v396_v62  ;;  %v399_v3 = vmul.f32 0.5, %v391_v63  ;;  %v543_v62 = vsub.s32 6, %v777_v10  ;;  %v538_v63 = vrot.slane %v801_v61, %v537_v60 }
 0x32f   :  { %v400_v4 = vmul.f32 0.5, %v398_v2  ;;  %v401_v5 = vadd.f32 1e-05, %v399_v3  ;;  %v544_v3 = vrot.slane %v801_v61, %v543_v62 }
 0x331   :  { %v402_v6 = vadd.f32 1e-05, %v400_v4  ;;  %705 = vrsqrt.f32 %v401_v5 }
 0x333   :  { %707 = vrsqrt.f32 %v402_v6 }
 0x33b   :  { %v706_v7 = vpop.eup %705 }
 0x33c   :  { %v405_v8 = vmul.f32 %v706_v7, %v381_v47 }
 0x33d   :  { %v708_v9 = vpop.eup %707 }
 0x33e   :  { %v406_v12 = vmul.f32 %v708_v9, %v382_v48  ;;  %407 = vst.msk [vmem:[%s881_s7] sm:$0x3] %vm364_vm4, %v405_v8 }
 0x340   :  { %408 = vst.msk [vmem:[%s881_s7 + $0x2] sm:$0x3] %vm364_vm4, %v406_v12  ;;  %v411_v13 = vcombine.low %v405_v8, %v406_v12 }
 0x342   :  { %v418_v14 = vrot.slane %v411_v13, %v781_v11 }
 0x344   :  { %v420_v15 = vpack.c.bf16 %v418_v14, %v418_v14 }
 0x346   :  { %682 = vmatmul.mubr.msk.bf16.vlgmr.msra.gmra.mrb[4].mxu1 %vm437_vm5, %v420_v15 }
 0x419   :  { %v475_v17 = vpop.f32.mrb[4].mxu1 }
 0x41a   :  { %v488_v18 = vrot.slane %v475_v17, %v781_v11  ;;  %v683_v19 = vpop.f32.mrb[5].mxu1  ;;  %v626_v17 = vsub.s32 7, %v777_v10 }
 0x41b   :  { %v478_v20 = vpop.f32.mrb[6].mxu1 }
 0x41c   :  { %v489_v21 = vcombine.high %v488_v18, %v488_v18  ;;  %v493_v22 = vsel %vm492_vm6, %v488_v18, 0.0  ;;  %v684_v23 = vpop.f32.mrb[7].mxu1 }
 0x41d   :  { %v494_v24 = vrot.slane %v493_v22, 4 }
 0x41e   :  { %v500_v25 = vsel %vm492_vm6, %v489_v21, 0.0 }
 0x41f   :  { %v495_v26 = vadd.f32 %v494_v24, %v493_v22  ;;  %v501_v27 = vrot.slane %v500_v25, 4 }
 0x421   :  { %v496_v28 = vrot.slane %v495_v26, 2  ;;  %v502_v29 = vadd.f32 %v501_v27, %v500_v25 }
 0x423   :  { %v497_v30 = vadd.f32 %v496_v28, %v495_v26  ;;  %v503_v31 = vrot.slane %v502_v29, 2 }
 0x425   :  { %v498_v0 = vrot.slane %v497_v30, 1  ;;  %v504_v32 = vadd.f32 %v503_v31, %v502_v29 }
 0x427   :  { %v499_v33 = vadd.f32 %v498_v0, %v497_v30  ;;  %v505_v34 = vrot.slane %v504_v32, 1 }
 0x429   :  { %v506_v35 = vadd.f32 %v505_v34, %v504_v32  ;;  %v507_v36 = vmul.f32 0.5, %v499_v33 }
 0x42b   :  { %v508_v37 = vmul.f32 0.5, %v506_v35  ;;  %v509_v38 = vsub.f32 %v488_v18, %v507_v36  ;;  %v627_v18 = vrot.slane %v801_v61, %v626_v17 }
 0x42d   :  { %v510_v39 = vsub.f32 %v489_v21, %v508_v37  ;;  %v511_v40 = vmul.f32 %v509_v38, %v509_v38 }
 0x42f   :  { %v512_v41 = vmul.f32 %v510_v39, %v510_v39  ;;  %v513_v42 = vsel %vm492_vm6, %v511_v40, 0.0 }
 0x430   :  { %v514_v43 = vrot.slane %v513_v42, 4 }
 0x431   :  { %v520_v44 = vsel %vm492_vm6, %v512_v41, 0.0 }
 0x432   :  { %v515_v45 = vadd.f32 %v514_v43, %v513_v42  ;;  %v521_v46 = vrot.slane %v520_v44, 4 }
 0x434   :  { %v516_v47 = vrot.slane %v515_v45, 2  ;;  %v522_v48 = vadd.f32 %v521_v46, %v520_v44 }
 0x436   :  { %v517_v49 = vadd.f32 %v516_v47, %v515_v45  ;;  %v523_v50 = vrot.slane %v522_v48, 2 }
 0x438   :  { %v518_v51 = vrot.slane %v517_v49, 1  ;;  %v524_v52 = vadd.f32 %v523_v50, %v522_v48 }
 0x43a   :  { %v519_v53 = vadd.f32 %v518_v51, %v517_v49  ;;  %v525_v54 = vrot.slane %v524_v52, 1 }
 0x43c   :  { %v526_v55 = vadd.f32 %v525_v54, %v524_v52  ;;  %v527_v56 = vmul.f32 0.5, %v519_v53 }
 0x43e   :  { %v528_v57 = vmul.f32 0.5, %v526_v55  ;;  %v529_v58 = vadd.f32 1e-05, %v527_v56 }
 0x440   :  { %v530_v59 = vadd.f32 1e-05, %v528_v57  ;;  %709 = vrsqrt.f32 %v529_v58 }
 0x442   :  { %711 = vrsqrt.f32 %v530_v59 }
 0x44a   :  { %v710_v1 = vpop.eup %709 }
 0x44b   :  { %v533_v2 = vmul.f32 %v710_v1, %v509_v38 }
 0x44c   :  { %v712_v4 = vpop.eup %711 }
 0x44d   :  { %v534_v5 = vmul.f32 %v712_v4, %v510_v39  ;;  %v539_v6 = vmul.f32 %v538_v63, %v533_v2 }
 0x44f   :  { %v540_v7 = vmul.f32 %v538_v63, %v534_v5  ;;  %v545_v8 = vadd.f32 %v544_v3, %v539_v6 }
 0x451   :  { %v546_v9 = vadd.f32 %v544_v3, %v540_v7  ;;  %v547_v12 = vmax.f32 %v545_v8, 0.0 }
 0x453   :  { %v548_v13 = vmax.f32 %v546_v9, 0.0 }
 0x455   :  { %v551_v14 = vcombine.low %v547_v12, %v548_v13 }
 0x457   :  { %v558_v15 = vrot.slane %v551_v14, %v781_v11 }
 0x459   :  { %v560_v16 = vpack.c.bf16 %v558_v15, %v558_v15 }
 0x45b   :  { %688 = vmatmul.mubr.msk.bf16.vlgmr.msra.gmra.mrb[8].mxu0 %vm569_vm7, %v560_v16 }
 0x52e   :  { %v607_v19 = vpop.f32.mrb[8].mxu0 }
 0x52f   :  { %v620_v20 = vrot.slane %v607_v19, %v781_v11  ;;  %v689_v21 = vpop.f32.mrb[9].mxu0 }
 0x530   :  { %v610_v22 = vpop.f32.mrb[10].mxu0 }
 0x531   :  { %v621_v23 = vcombine.high %v620_v20, %v620_v20  ;;  %v628_v24 = vadd.f32 %v627_v18, %v620_v20  ;;  %v690_v25 = vpop.f32.mrb[11].mxu0 }
 0x533   :  { %v629_v26 = vadd.f32 %v627_v18, %v621_v23  ;;  %630 = vst.msk [vmem:[%s883_s8] sm:$0x3] %vm364_vm4, %v628_v24 }
 0x535   :  { %631 = vst.msk [vmem:[%s883_s8 + $0x2] sm:$0x3] %vm364_vm4, %v629_v26 }

</bundles_post_ra>
